<compile_context>
chip_gen: v5e
topology: v5e:2x2
jax: 0.10.0
libtpu: 0.0.40
codegen_flags: <defaults>
</compile_context>

<pallas_src>
import functools

import jax
import jax.numpy as jnp
import numpy as np
from jax import lax
from jax.experimental import pallas as pl
from jax.experimental.pallas import tpu as pltpu


def _round_up(x, m):
    return ((x + m - 1) // m) * m


def _cdiv(a, b):
    return (a + b - 1) // b


@functools.lru_cache(maxsize=16)
def _cos_dft_np(T, n_bins, n_rows, n_cols):
    """(n_rows, n_cols) float32 cos-DFT matrix, valid region [:T, :n_bins]:
    cos(2*pi*((t*k) mod T)/T); padding rows/cols are zeros (lane/sublane alignment,
    exact zero contribution for ragged K tiles)."""
    t = np.arange(T, dtype=np.int64)
    k = np.arange(n_bins, dtype=np.int64)
    phase = (t[:, None] * k[None, :]) % T          # exact integer mod, no f32 arg-reduction error
    mat = np.cos(2.0 * np.pi * phase.astype(np.float64) / T).astype(np.float32)
    out = np.zeros((n_rows, n_cols), dtype=np.float32)
    out[:T, :n_bins] = mat
    return out


def _dft_kernel(x_ref, cos_ref, o_ref, *, precision):
    # (TM, T) @ (T, n_pad) on the MXU, f32 accumulation, lane-dense store.
    o_ref[...] = jnp.dot(
        x_ref[...], cos_ref[...],
        preferred_element_type=jnp.float32, precision=precision)


def _dft_acc_kernel(x_ref, cos_ref, o_ref, acc_ref, *, precision):
    # Large-T path: K-tiled reduction into an f32 VMEM accumulator.
    @pl.when(pl.program_id(2) == 0)
    def _():
        acc_ref[...] = jnp.zeros_like(acc_ref)

    acc_ref[...] += jnp.dot(
        x_ref[...], cos_ref[...],
        preferred_element_type=jnp.float32, precision=precision)

    @pl.when(pl.program_id(2) == pl.num_programs(2) - 1)
    def _():
        o_ref[...] = acc_ref[...]


def convert_to_frequency_fft(data, *, high_precision=False, force_tiled=False):
    """JAX/Pallas equivalent of convert_to_frequency(ftype='fft')(data).

    data: (B, C, T) real array.  Returns float32 (B, C, T) = fft(data, dim=2).real
    """
    B, C, T = data.shape
    M = B * C

    if high_precision:
        in_dtype, in_size, precision = jnp.float32, 4, lax.Precision.HIGHEST
    else:
        # DEFAULT MXU precision truncates operands to bf16 anyway; casting explicitly
        # halves HBM reads and VMEM residency with unchanged numerics.
        in_dtype, in_size, precision = jnp.bfloat16, 2, None

    x = data.reshape(M, T).astype(in_dtype)

    # Generation-aware VMEM budget (v7x: 64 MiB physical -> 48 MiB; v5e/v6e: 96 MiB).
    try:
        vmem_cap = pltpu.get_tpu_info().vmem_capacity_bytes
    except Exception:
        vmem_cap = 64 * 1024 * 1024          # conservative fallback (v7x sized)
    budget = min(int(vmem_cap) * 3 // 4, 96 * 1024 * 1024)

    GRID_TARGET = 8        # >=8 grid steps when M allows: pipelining + v7x 2-TC sharding
    TM_MAX = 512
    TM = min(TM_MAX, max(16, _round_up(_cdiv(M, GRID_TARGET), 16)))
    n_pad = max(128, _round_up(T, 128))      # lane-dense kernel store width

    def _resident_bytes(tm):
        # 2x per operand = double buffering (cos counted conservatively as 2x too).
        return (2 * T * n_pad * in_size      # resident cos matrix
                + 2 * tm * T * in_size       # streamed x tile
                + 2 * tm * n_pad * 4)        # f32 output tile

    # Shrink TM (never the output/N axis) until the resident-cos path fits.
    while TM > 16 and _resident_bytes(TM) > budget:
        TM = max(16, _round_up(TM // 2, 16))

    if _resident_bytes(TM) <= budget and not force_tiled:
        # ---------- Path A: resident full-spectrum cos, 1-D pipelined grid over M ----------
        cos_full = jnp.asarray(_cos_dft_np(T, T, T, n_pad), dtype=in_dtype)

        params = {"dimension_semantics": ("parallel",)}
        need = _resident_bytes(TM)
        if need > 12 * 1024 * 1024:          # v5e default scoped VMEM is only 16 MiB
            params["vmem_limit_bytes"] = int(min(budget, need * 13 // 10))

        out_pad = pl.pallas_call(
            functools.partial(_dft_kernel, precision=precision),
            out_shape=jax.ShapeDtypeStruct((M, n_pad), jnp.float32),
            grid=(_cdiv(M, TM),),
            in_specs=[
                pl.BlockSpec((TM, T), lambda i: (i, 0)),       # streamed x row-tiles (ragged last tile masked)
                pl.BlockSpec((T, n_pad), lambda i: (0, 0)),    # cos stays resident (constant index_map)
            ],
            out_specs=pl.BlockSpec((TM, n_pad), lambda i: (i, 0)),
            compiler_params=pltpu.CompilerParams(**params),
        )(x, cos_full)

        full = out_pad if n_pad == T else out_pad[:, :T]
        return full.reshape(B, C, T)

    # ---------- Path B: large T; K/N-tiled half-spectrum matmul with f32 accumulator ----------
    n_half = T // 2 + 1
    TN = 256                                  # matches v6e/v7x 256-wide MXU; multiple of v5e's 128
    TK = 512
    TM_b = min(256, max(16, _round_up(_cdiv(M, GRID_TARGET), 16)))

    T_pad = _round_up(T, TK)
    n_half_pad = _round_up(n_half, TN)
    if T_pad != T:
        # Zero-pad the reduction axis so ragged K tiles contribute exactly zero.
        # One extra pass over x, negligible vs the compute-bound matmul at this scale.
        x = jnp.pad(x, ((0, 0), (0, T_pad - T)))

    cos_half = jnp.asarray(_cos_dft_np(T, n_half, T_pad, n_half_pad), dtype=in_dtype)

    half = pl.pallas_call(
        functools.partial(_dft_acc_kernel, precision=precision),
        out_shape=jax.ShapeDtypeStruct((M, n_half), jnp.float32),
        grid=(_cdiv(M, TM_b), n_half_pad // TN, T_pad // TK),   # reduction axis last
        in_specs=[
            pl.BlockSpec((TM_b, TK), lambda i, j, k: (i, k)),
            pl.BlockSpec((TK, TN), lambda i, j, k: (k, j)),
        ],
        out_specs=pl.BlockSpec((TM_b, TN), lambda i, j, k: (i, j)),
        scratch_shapes=[pltpu.VMEM((TM_b, TN), jnp.float32)],
        compiler_params=pltpu.CompilerParams(
            dimension_semantics=("parallel", "parallel", "arbitrary")),
    )(x, cos_half)

    # Mirror Re(X[k]) = Re(X[T-k]).  Compute-bound regime here, so this pass is noise.
    mirror = jnp.flip(half[:, 1: T - T // 2], axis=1)
    full = jnp.concatenate([half, mirror], axis=1)
    return full.reshape(B, C, T)


if __name__ == "__main__":
    key = jax.random.PRNGKey(0)
    # (batch, channels, time) for the 'fft' path
    data = jax.random.normal(key, (2, 4, 16), dtype=jnp.float32)

    result = jax.block_until_ready(convert_to_frequency_fft(data))
    assert result.shape == (2, 4, 16)
    assert result.dtype == jnp.float32

    # Reference check (matches torch.fft.fft(...).real.float()).  bf16 MXU operands
    # => compare with a tolerance scaled to the spectrum magnitude.
    ref = np.asarray(jnp.fft.fft(data, axis=2).real.astype(jnp.float32))
    res = np.asarray(result)
    tol = 1e-2 * float(np.max(np.abs(ref))) + 1e-3
    max_err = float(np.max(np.abs(res - ref)))
    assert max_err < tol, f"fft path: max_err={max_err} tol={tol}"

    # Also exercise the large-T K-tiled accumulator path (half spectrum + mirror).
    data2 = jax.random.normal(jax.random.PRNGKey(1), (2, 4, 640), dtype=jnp.float32)
    res2 = np.asarray(jax.block_until_ready(
        convert_to_frequency_fft(data2, force_tiled=True)))
    ref2 = np.asarray(jnp.fft.fft(data2, axis=2).real.astype(jnp.float32))
    tol2 = 1e-2 * float(np.max(np.abs(ref2))) + 1e-3
    max_err2 = float(np.max(np.abs(res2 - ref2)))
    assert res2.shape == (2, 4, 640)
    assert max_err2 < tol2, f"tiled path: max_err={max_err2} tol={tol2}"

    print("KERNEL_OK")
</pallas_src>

<mosaic_0001>
module attributes {stable_mosaic.version = 11 : i64} {
  func.func @_dft_kernel(%arg0: i32, %arg1: memref<16x16xbf16, #tpu.memory_space<vmem>>, %arg2: memref<16x128xbf16, #tpu.memory_space<vmem>>, %arg3: memref<16x128xf32, #tpu.memory_space<vmem>>) attributes {dimension_semantics = [#tpu.dimension_semantics<parallel>], iteration_bounds = array<i64: 1>, scalar_prefetch = 0 : i64, scratch_operands = 0 : i64, tpu.core_type = #tpu.core_type<tc>, window_params = [{transform_indices = @transform_0, window_bounds = array<i64: 16, 16>}, {pipeline_mode = #tpu.pipeline_mode<synchronous>, transform_indices = @transform_1, window_bounds = array<i64: 16, 128>}, {transform_indices = @transform_2, window_bounds = array<i64: 16, 128>}]} {
    %c0 = arith.constant 0 : index
    %c0_0 = arith.constant 0 : index
    %0 = vector.load %arg1[%c0, %c0_0] : memref<16x16xbf16, #tpu.memory_space<vmem>>, vector<16x16xbf16>
    %c0_1 = arith.constant 0 : index
    %c0_2 = arith.constant 0 : index
    %1 = vector.load %arg2[%c0_1, %c0_2] : memref<16x128xbf16, #tpu.memory_space<vmem>>, vector<16x128xbf16>
    %cst = arith.constant dense<0.000000e+00> : vector<16x128xf32>
    %2 = tpu.matmul %0, %1, %cst {dimension_numbers = #tpu.dot_dimension_numbers<[1], [0], [0], [1], [0, 0, 1, 1], [], []>} : vector<16x16xbf16>, vector<16x128xbf16>, vector<16x128xf32> -> vector<16x128xf32>
    %c0_3 = arith.constant 0 : index
    %c0_4 = arith.constant 0 : index
    %3 = vector.load %arg3[%c0_3, %c0_4] : memref<16x128xf32, #tpu.memory_space<vmem>>, vector<16x128xf32>
    tpu.vector_store %arg3[%c0_3, %c0_4], %2 {strides = array<i32>} : memref<16x128xf32, #tpu.memory_space<vmem>>, vector<16x128xf32>,
    return
  }
  func.func @transform_0(%arg0: i32) -> (i32, i32) {
    %c0_i32 = arith.constant 0 : i32
    %c0_i32_0 = arith.constant 0 : i32
    return %arg0, %c0_i32 : i32, i32
  }
  func.func @transform_1(%arg0: i32) -> (i32, i32) {
    %c0_i32 = arith.constant 0 : i32
    %c0_i32_0 = arith.constant 0 : i32
    %c0_i32_1 = arith.constant 0 : i32
    return %c0_i32, %c0_i32_0 : i32, i32
  }
  func.func @transform_2(%arg0: i32) -> (i32, i32) {
    %c0_i32 = arith.constant 0 : i32
    %c0_i32_0 = arith.constant 0 : i32
    return %arg0, %c0_i32 : i32, i32
  }
}

</mosaic_0001>

<bundles_post_ra>
// kernel: tpu_custom_call.1
= control target key start
LH: loop header
LB: loop body
LE: loop exit
PB: predicated region body
PF: predicated region fallthrough
CT: control target
= control target key end

     0   :  { %7 = vsyncpa [#allocation3], 0  ;;  %s227_s0 = inlined_call_operand.hbm [shape: bf16[8,16], index: 0, kind: input, shape index: {}]   ;;  %s228_s1 = inlined_call_operand.hbm [shape: bf16[16,128], index: 1, kind: input, shape index: {}]   ;;  %s229_s2 = inlined_call_operand.hbm [shape: f32[8,128], index: 2, kind: output, shape index: {}]  }
   0x1   :  { %8 = vsyncpa [#allocation6], 0 }
   0x2   :  { %9 = vsyncpa [#allocation4], 0 }
   0x3   :  { %13 = vsyncadd [#allocation3], 64  ;;  %s14_s11 = sshll.u32 %s227_s0, 4  ;;  %s196_s12 = smov [#allocation2]   ;;  %s15_s11 = int_to_ptr.hbm [resolvable:$true] %s14_s11 }
   0x4   :  { %s16_s13 = sshll.u32 %s196_s12, 4  ;;  %s27_s16 = sshll.u32 %s228_s1, 4  ;;  %s17_s13 = int_to_ptr.vmem [resolvable:$true] %s16_s13  ;;  %s28_s16 = int_to_ptr.hbm [resolvable:$true] %s27_s16 }
   0x5   :  { %s197_s17 = smov 64   ;;  %s198_s18 = smov 4  }
   0x6   :  { %22 = dma.hbm_to_vmem [thread:$0]  %s15_s11, 64, %s17_s13, [#allocation3], %s197_s17, %s197_s17, %s198_s18  }
   0x7   :  { %s199_s19 = smov [#allocation5]  }
   0x8   :  { %s29_s20 = sshll.u32 %s199_s19, 4  ;;  %s30_s20 = int_to_ptr.vmem [resolvable:$true] %s29_s20 }
   0x9   :  { %35 = dma.hbm_to_vmem [thread:$0]  %s28_s16, 128, %s30_s20, [#allocation6], %s197_s17, %s197_s17, %s198_s18  }
   0xa   :  { %190 = dma.done.wait [#allocation3], 128  }
   0xb   :  { %191 = vsyncadd [#allocation3], 4294967168 }
   0xc   :  { %192 = dma.done.wait [#allocation6], 128  }
   0xd   :  { %193 = vsyncadd [#allocation6], 4294967168  ;;  %v110_v0 = vld [vmem:[#allocation5] sm:$0xff]  ;;  %v109_v1 = vld [vmem:[#allocation2] sm:$0xff]  ;;  %vm60_vm0 = vcmask 130048  }
   0xe   :  { %71 = vmatpush.bf16.msra.mxu0 %v110_v0 }
  0x11   :  { %108 = vmatmul.msk.bf16.vlgmr.msra.gmra.mxu0 %vm60_vm0, %v109_v1 }
  0x8e   :  { %v73_v2 = vpop.f32.mrf.mxu0 }
  0x8f   :  { %78 = vst [vmem:[#allocation7] sm:$0xff] %v73_v2 }
  0x96   :  { %v75_v3 = vpop.f32.mrf.mxu0 }
  0x97   :  { %79 = vst [vmem:[#allocation7 + $0x8] sm:$0xff] %v75_v3 }
  0x98   :  { %83 = vsyncadd [#allocation4], 128  ;;  %s86_s21 = sshll.u32 %s229_s2, 4  ;;  %s200_s22 = smov [#allocation7]   ;;  %s87_s21 = int_to_ptr.hbm [resolvable:$true] %s86_s21 }
  0x99   :  { %s84_s23 = sshll.u32 %s200_s22, 4  ;;  %s201_s24 = smov 128   ;;  %s85_s23 = int_to_ptr.vmem [resolvable:$true] %s84_s23 }
  0x9a   :  { %s202_s25 = smov 8  }
  0x9b   :  { %92 = dma.vmem_to_hbm [thread:$0]  %s85_s23, 128, %s87_s21, [#allocation4], %s201_s24, %s201_s24, %s202_s25  }
  0x9c   :  { %194 = dma.done.wait [#allocation4], 256  }
  0x9d   :  { %195 = vsyncadd [#allocation4], 4294967040 }
  0x9e   :  { %97 = vsyncpa [#allocation3], 1 }
  0x9f   :  { %98 = vsyncpa [#allocation6], 1 }
  0xa0   :  { %99 = vsyncpa [#allocation4], 1 }

</bundles_post_ra>
